<compile_context>
chip_gen: v6e
topology: v6e:2x2x1
jax: 0.10.0
libtpu: 0.0.40
codegen_flags: <defaults>
</compile_context>

<pallas_src>
import numpy as np

import jax
import jax.numpy as jnp
from jax import lax
from jax.experimental import pallas as pl
from jax.experimental.pallas import tpu as pltpu


# ---------------------------------------------------------------------------
# Fused kernel: conv1 -> avgpool -> conv2 -> +9 for one image (grid over batch)
# ---------------------------------------------------------------------------
def _fused_kernel(x_ref, w1t_ref, b1_ref, w2t_ref, b2_ref, p_ref, cnt_ref, o_ref):
    # x_ref:   (Cin, H*W)      image, channel-major, pixels on lanes
    # w1t_ref: (C1, Cin)       conv1 weight, transposed
    # b1_ref:  (C1, 1)         conv1 bias (column)
    # w2t_ref: (C2, C1)        conv2 weight, transposed
    # b2_ref:  (C2, 1)         conv2 bias (column)
    # p_ref:   (H*W, Ho*Wo)    precomputed pooling map (real pixels -> output grid)
    # cnt_ref: (1, Ho*Wo)      (#pool-window cells inside conv1 output) / 9
    # o_ref:   (C2, Ho*Wo)     final NCHW-flat output block

    # conv1: Cin=3 is far too shallow for the MXU -> VPU broadcast-FMAs.
    cin = x_ref.shape[0]
    acc = w1t_ref[:, 0:1] * x_ref[0:1, :]                    # (C1, H*W)
    for c in range(1, cin):
        acc = acc + w1t_ref[:, c:c + 1] * x_ref[c:c + 1, :]

    # AvgPool(3, s=2, p=1, count_include_pad) + conv1's pad=3 bias frame +
    # conv2's pad=1 zero frame, all folded into one linear map:
    #   interior column r: y2[:, r] = sum_pix P[pix, r] * acc[:, pix] + cnt[r] * b1
    #   conv2-pad column r: y2[:, r] = 0    (so conv2 yields bias-only there)
    y2 = jnp.dot(acc, p_ref[...], preferred_element_type=jnp.float32)   # (C1, Ho*Wo)
    y2 = y2 + b1_ref[...] * cnt_ref[...]

    # conv2 (1x1, K=32) on the MXU, + bias + 9 fused into the store.
    y3 = jnp.dot(w2t_ref[...], y2, preferred_element_type=jnp.float32)  # (C2, Ho*Wo)
    o_ref[...] = y3 + b2_ref[...] + 9.0


def _pool_matrix(h, w):
    """Host-side (numpy) constants encoding pool + padding geometry."""
    h1, w1 = h + 6, w + 6                      # conv1 output spatial (pad=3)
    hp = (h1 - 1) // 2 + 1                     # pool output spatial (k=3, s=2, p=1, floor)
    wp = (w1 - 1) // 2 + 1
    ho, wo = hp + 2, wp + 2                    # conv2 output spatial (pad=1)
    pmat = np.zeros((h * w, ho * wo), np.float32)
    cnt = np.zeros((1, ho * wo), np.float32)
    for p in range(hp):
        for q in range(wp):
            r = (p + 1) * wo + (q + 1)         # interior position in conv2 output grid
            for di in (-1, 0, 1):
                for dj in (-1, 0, 1):
                    i1, j1 = 2 * p + di, 2 * q + dj        # coords in conv1 output
                    if 0 <= i1 < h1 and 0 <= j1 < w1:      # inside conv1 output -> gets b1
                        cnt[0, r] += 1.0 / 9.0
                        if 3 <= i1 < h + 3 and 3 <= j1 < w + 3:   # real pixel
                            pmat[(i1 - 3) * w + (j1 - 3), r] += 1.0 / 9.0
    return pmat, cnt, ho, wo


# ---------------------------------------------------------------------------
# Forward wrapper (input/output in NCHW like PyTorch; reshapes only, no transposes)
# ---------------------------------------------------------------------------
def model_forward(x_nchw, params):
    w1, b1, w2, b2 = params
    n, cin, h, w = x_nchw.shape
    c1, c2 = w1.shape[1], w2.shape[1]
    pmat_np, cnt_np, ho, wo = _pool_matrix(h, w)
    hw, howo = h * w, ho * wo

    # Pure layout plumbing: free order-preserving reshapes + tiny weight transposes.
    x2d = x_nchw.reshape(n, cin, hw).astype(jnp.float32)
    w1t = jnp.transpose(w1).astype(jnp.float32)        # (C1, Cin)
    b1c = b1.reshape(c1, 1).astype(jnp.float32)
    w2t = jnp.transpose(w2).astype(jnp.float32)        # (C2, C1)
    b2c = b2.reshape(c2, 1).astype(jnp.float32)
    pmat = jnp.asarray(pmat_np)
    cnt = jnp.asarray(cnt_np)

    out2d = pl.pallas_call(
        _fused_kernel,
        out_shape=jax.ShapeDtypeStruct((n, c2, howo), jnp.float32),
        grid=(n,),
        in_specs=[
            pl.BlockSpec((None, cin, hw), lambda i: (i, 0, 0)),   # per-image block
            pl.BlockSpec((c1, cin), lambda i: (0, 0)),
            pl.BlockSpec((c1, 1), lambda i: (0, 0)),
            pl.BlockSpec((c2, c1), lambda i: (0, 0)),
            pl.BlockSpec((c2, 1), lambda i: (0, 0)),
            pl.BlockSpec((hw, howo), lambda i: (0, 0)),
            pl.BlockSpec((1, howo), lambda i: (0, 0)),
        ],
        out_specs=pl.BlockSpec((None, c2, howo), lambda i: (i, 0, 0)),
        compiler_params=pltpu.CompilerParams(dimension_semantics=("parallel",)),
    )(x2d, w1t, b1c, w2t, b2c, pmat, cnt)
    return out2d.reshape(n, c2, ho, wo)


# ---------------------------------------------------------------------------
# Pure-JAX reference for correctness checking (matches PyTorch semantics)
# ---------------------------------------------------------------------------
def reference_forward(x_nchw, params):
    w1, b1, w2, b2 = params
    k1 = jnp.transpose(w1, (1, 0))[:, :, None, None]  # (Cout, Cin, 1, 1)
    k2 = jnp.transpose(w2, (1, 0))[:, :, None, None]
    dn = ("NCHW", "OIHW", "NCHW")
    v1 = lax.conv_general_dilated(
        x_nchw, k1, (1, 1), ((3, 3), (3, 3)), dimension_numbers=dn
    ) + b1[None, :, None, None]
    v2 = lax.reduce_window(
        v1, 0.0, lax.add, (1, 1, 3, 3), (1, 1, 2, 2),
        ((0, 0), (0, 0), (1, 1), (1, 1)),
    ) / 9.0
    v3 = lax.conv_general_dilated(
        v2, k2, (1, 1), ((1, 1), (1, 1)), dimension_numbers=dn
    ) + b2[None, :, None, None]
    return v3 + 9.0


if __name__ == "__main__":
    key = jax.random.PRNGKey(0)
    kw1, kb1, kw2, kb2, kx = jax.random.split(key, 5)

    # Deterministic synthetic parameters (shapes from the module's __init__).
    w1 = 0.1 * jax.random.normal(kw1, (3, 32), jnp.float32)    # conv1 weight (Cin, Cout)
    b1 = 0.1 * jax.random.normal(kb1, (32,), jnp.float32)      # conv1 bias
    w2 = 0.1 * jax.random.normal(kw2, (32, 64), jnp.float32)   # conv2 weight
    b2 = 0.1 * jax.random.normal(kb2, (64,), jnp.float32)      # conv2 bias
    params = (w1, b1, w2, b2)

    # Small input consistent with the module: NCHW, 3 input channels.
    x = jax.random.normal(kx, (2, 3, 16, 16), jnp.float32)

    fwd = jax.jit(model_forward)
    out = fwd(x, params)
    out = jax.block_until_ready(out)

    ref = reference_forward(x, params)
    assert out.shape == ref.shape, (out.shape, ref.shape)
    assert jnp.allclose(out, ref, atol=2e-3, rtol=2e-3), (
        "max abs diff", float(jnp.max(jnp.abs(out - ref)))
    )

    print("KERNEL_OK")
</pallas_src>

<mosaic_0001>
module attributes {stable_mosaic.version = 11 : i64} {
  func.func @_fused_kernel(%arg0: i32, %arg1: memref<1x3x256xf32, #tpu.memory_space<vmem>>, %arg2: memref<32x3xf32, #tpu.memory_space<vmem>>, %arg3: memref<32x1xf32, #tpu.memory_space<vmem>>, %arg4: memref<64x32xf32, #tpu.memory_space<vmem>>, %arg5: memref<64x1xf32, #tpu.memory_space<vmem>>, %arg6: memref<256x169xf32, #tpu.memory_space<vmem>>, %arg7: memref<1x169xf32, #tpu.memory_space<vmem>>, %arg8: memref<1x64x169xf32, #tpu.memory_space<vmem>>) attributes {dimension_semantics = [#tpu.dimension_semantics<parallel>], iteration_bounds = array<i64: 2>, scalar_prefetch = 0 : i64, scratch_operands = 0 : i64, tpu.core_type = #tpu.core_type<tc>, window_params = [{transform_indices = @transform_0, window_bounds = array<i64: 1, 3, 256>}, {pipeline_mode = #tpu.pipeline_mode<synchronous>, transform_indices = @transform_1, window_bounds = array<i64: 32, 3>}, {pipeline_mode = #tpu.pipeline_mode<synchronous>, transform_indices = @transform_2, window_bounds = array<i64: 32, 1>}, {pipeline_mode = #tpu.pipeline_mode<synchronous>, transform_indices = @transform_3, window_bounds = array<i64: 64, 32>}, {pipeline_mode = #tpu.pipeline_mode<synchronous>, transform_indices = @transform_4, window_bounds = array<i64: 64, 1>}, {pipeline_mode = #tpu.pipeline_mode<synchronous>, transform_indices = @transform_5, window_bounds = array<i64: 256, 169>}, {pipeline_mode = #tpu.pipeline_mode<synchronous>, transform_indices = @transform_6, window_bounds = array<i64: 1, 169>}, {transform_indices = @transform_7, window_bounds = array<i64: 1, 64, 169>}]} {
    %c0 = arith.constant 0 : index
    %c0_0 = arith.constant 0 : index
    %0 = vector.load %arg2[%c0, %c0_0] : memref<32x3xf32, #tpu.memory_space<vmem>>, vector<32x1xf32>
    %c0_1 = arith.constant 0 : index
    %c0_2 = arith.constant 0 : index
    %c0_3 = arith.constant 0 : index
    %1 = vector.load %arg1[%c0_1, %c0_2, %c0_3] : memref<1x3x256xf32, #tpu.memory_space<vmem>>, vector<1x1x256xf32>
    %2 = vector.shape_cast %1 : vector<1x1x256xf32> to vector<1x256xf32>
    %3 = vector.broadcast %0 : vector<32x1xf32> to vector<32x256xf32>
    %4 = vector.broadcast %2 : vector<1x256xf32> to vector<32x256xf32>
    %5 = arith.mulf %3, %4 : vector<32x256xf32>
    %c0_4 = arith.constant 0 : index
    %c1 = arith.constant 1 : index
    %6 = vector.load %arg2[%c0_4, %c1] : memref<32x3xf32, #tpu.memory_space<vmem>>, vector<32x1xf32>
    %c0_5 = arith.constant 0 : index
    %c1_6 = arith.constant 1 : index
    %c0_7 = arith.constant 0 : index
    %7 = vector.load %arg1[%c0_5, %c1_6, %c0_7] : memref<1x3x256xf32, #tpu.memory_space<vmem>>, vector<1x1x256xf32>
    %8 = vector.shape_cast %7 : vector<1x1x256xf32> to vector<1x256xf32>
    %9 = vector.broadcast %6 : vector<32x1xf32> to vector<32x256xf32>
    %10 = vector.broadcast %8 : vector<1x256xf32> to vector<32x256xf32>
    %11 = arith.mulf %9, %10 : vector<32x256xf32>
    %12 = arith.addf %5, %11 : vector<32x256xf32>
    %c0_8 = arith.constant 0 : index
    %c2 = arith.constant 2 : index
    %13 = vector.load %arg2[%c0_8, %c2] : memref<32x3xf32, #tpu.memory_space<vmem>>, vector<32x1xf32>
    %c0_9 = arith.constant 0 : index
    %c2_10 = arith.constant 2 : index
    %c0_11 = arith.constant 0 : index
    %14 = vector.load %arg1[%c0_9, %c2_10, %c0_11] : memref<1x3x256xf32, #tpu.memory_space<vmem>>, vector<1x1x256xf32>
    %15 = vector.shape_cast %14 : vector<1x1x256xf32> to vector<1x256xf32>
    %16 = vector.broadcast %13 : vector<32x1xf32> to vector<32x256xf32>
    %17 = vector.broadcast %15 : vector<1x256xf32> to vector<32x256xf32>
    %18 = arith.mulf %16, %17 : vector<32x256xf32>
    %19 = arith.addf %12, %18 : vector<32x256xf32>
    %c0_12 = arith.constant 0 : index
    %c0_13 = arith.constant 0 : index
    %20 = vector.load %arg6[%c0_12, %c0_13] : memref<256x169xf32, #tpu.memory_space<vmem>>, vector<256x169xf32>
    %cst = arith.constant dense<0.000000e+00> : vector<32x169xf32>
    %21 = tpu.matmul %19, %20, %cst {dimension_numbers = #tpu.dot_dimension_numbers<[1], [0], [0], [1], [0, 0, 1, 1], [], []>} : vector<32x256xf32>, vector<256x169xf32>, vector<32x169xf32> -> vector<32x169xf32>
    %c0_14 = arith.constant 0 : index
    %c0_15 = arith.constant 0 : index
    %22 = vector.load %arg3[%c0_14, %c0_15] : memref<32x1xf32, #tpu.memory_space<vmem>>, vector<32x1xf32>
    %c0_16 = arith.constant 0 : index
    %c0_17 = arith.constant 0 : index
    %23 = vector.load %arg7[%c0_16, %c0_17] : memref<1x169xf32, #tpu.memory_space<vmem>>, vector<1x169xf32>
    %24 = vector.broadcast %22 : vector<32x1xf32> to vector<32x169xf32>
    %25 = vector.broadcast %23 : vector<1x169xf32> to vector<32x169xf32>
    %26 = arith.mulf %24, %25 : vector<32x169xf32>
    %27 = arith.addf %21, %26 : vector<32x169xf32>
    %c0_18 = arith.constant 0 : index
    %c0_19 = arith.constant 0 : index
    %28 = vector.load %arg4[%c0_18, %c0_19] : memref<64x32xf32, #tpu.memory_space<vmem>>, vector<64x32xf32>
    %cst_20 = arith.constant dense<0.000000e+00> : vector<64x169xf32>
    %29 = tpu.matmul %28, %27, %cst_20 {dimension_numbers = #tpu.dot_dimension_numbers<[1], [0], [0], [1], [0, 0, 1, 1], [], []>} : vector<64x32xf32>, vector<32x169xf32>, vector<64x169xf32> -> vector<64x169xf32>
    %c0_21 = arith.constant 0 : index
    %c0_22 = arith.constant 0 : index
    %30 = vector.load %arg5[%c0_21, %c0_22] : memref<64x1xf32, #tpu.memory_space<vmem>>, vector<64x1xf32>
    %31 = vector.broadcast %30 : vector<64x1xf32> to vector<64x169xf32>
    %32 = arith.addf %29, %31 : vector<64x169xf32>
    %cst_23 = arith.constant 9.000000e+00 : f32
    %33 = vector.broadcast %cst_23 : f32 to vector<64x169xf32>
    %34 = arith.addf %32, %33 : vector<64x169xf32>
    %c0_24 = arith.constant 0 : index
    %c0_25 = arith.constant 0 : index
    %c0_26 = arith.constant 0 : index
    %35 = vector.load %arg8[%c0_24, %c0_25, %c0_26] : memref<1x64x169xf32, #tpu.memory_space<vmem>>, vector<1x64x169xf32>
    %36 = vector.shape_cast %35 : vector<1x64x169xf32> to vector<64x169xf32>
    %37 = vector.shape_cast %34 : vector<64x169xf32> to vector<1x64x169xf32>
    tpu.vector_store %arg8[%c0_24, %c0_25, %c0_26], %37 {strides = array<i32>} : memref<1x64x169xf32, #tpu.memory_space<vmem>>, vector<1x64x169xf32>,
    return
  }
  func.func @transform_0(%arg0: i32) -> (i32, i32, i32) {
    %c0_i32 = arith.constant 0 : i32
    %c0_i32_0 = arith.constant 0 : i32
    %c0_i32_1 = arith.constant 0 : i32
    return %arg0, %c0_i32, %c0_i32_0 : i32, i32, i32
  }
  func.func @transform_1(%arg0: i32) -> (i32, i32) {
    %c0_i32 = arith.constant 0 : i32
    %c0_i32_0 = arith.constant 0 : i32
    %c0_i32_1 = arith.constant 0 : i32
    return %c0_i32, %c0_i32_0 : i32, i32
  }
  func.func @transform_2(%arg0: i32) -> (i32, i32) {
    %c0_i32 = arith.constant 0 : i32
    %c0_i32_0 = arith.constant 0 : i32
    %c0_i32_1 = arith.constant 0 : i32
    return %c0_i32, %c0_i32_0 : i32, i32
  }
  func.func @transform_3(%arg0: i32) -> (i32, i32) {
    %c0_i32 = arith.constant 0 : i32
    %c0_i32_0 = arith.constant 0 : i32
    %c0_i32_1 = arith.constant 0 : i32
    return %c0_i32, %c0_i32_0 : i32, i32
  }
  func.func @transform_4(%arg0: i32) -> (i32, i32) {
    %c0_i32 = arith.constant 0 : i32
    %c0_i32_0 = arith.constant 0 : i32
    %c0_i32_1 = arith.constant 0 : i32
    return %c0_i32, %c0_i32_0 : i32, i32
  }
  func.func @transform_5(%arg0: i32) -> (i32, i32) {
    %c0_i32 = arith.constant 0 : i32
    %c0_i32_0 = arith.constant 0 : i32
    %c0_i32_1 = arith.constant 0 : i32
    return %c0_i32, %c0_i32_0 : i32, i32
  }
  func.func @transform_6(%arg0: i32) -> (i32, i32) {
    %c0_i32 = arith.constant 0 : i32
    %c0_i32_0 = arith.constant 0 : i32
    %c0_i32_1 = arith.constant 0 : i32
    return %c0_i32, %c0_i32_0 : i32, i32
  }
  func.func @transform_7(%arg0: i32) -> (i32, i32, i32) {
    %c0_i32 = arith.constant 0 : i32
    %c0_i32_0 = arith.constant 0 : i32
    %c0_i32_1 = arith.constant 0 : i32
    return %arg0, %c0_i32, %c0_i32_0 : i32, i32, i32
  }
}

</mosaic_0001>

<bundles_post_ra>
// kernel: model_forward.1
= control target key start
LH: loop header
LB: loop body
LE: loop exit
PB: predicated region body
PF: predicated region fallthrough
CT: control target
= control target key end

     0   :  { %12 = vsyncpa [#allocation3], 0  ;;  %s1067_s24 = smov 0   ;;  %s1240_s0 = inlined_call_operand.vmem [shape: f32[2,3,256], index: 0, kind: input, shape index: {}]   ;;  %s1241_s1 = inlined_call_operand.vmem [shape: f32[32,3], index: 1, kind: input, shape index: {}]   ;;  %s1242_s2 = inlined_call_operand.vmem [shape: f32[32,1], index: 2, kind: input, shape index: {}]   ;;  %s1243_s3 = inlined_call_operand.vmem [shape: f32[64,32], index: 3, kind: input, shape index: {}]   ;;  %s1244_s4 = inlined_call_operand.vmem [shape: f32[64,1], index: 4, kind: input, shape index: {}]   ;;  %s1245_s5 = inlined_call_operand.hbm [shape: f32[256,169], index: 5, kind: input, shape index: {}]   ;;  %s1246_s6 = inlined_call_operand.vmem [shape: f32[1,169], index: 6, kind: input, shape index: {}]   ;;  %s1247_s7 = inlined_call_operand.vmem [shape: f32[2,64,169], index: 7, kind: output, shape index: {}]  }
   0x1 LB: > { %s1073_s25 = sadd.s32 4294967295, %s1018_s24   ;;  %p921_p0 = scmp.ge.s32.totalorder %s1018_s24, 1  ;;  %s1018_s24 = sphi %s1067_s24, %s18_s24  }
   0x2   : > { %p201_p1 = scmp.lt.s32.totalorder %s1018_s24, 3  ;;  %s1020_s26 = smov [#allocation2]  }
   0x3   : > { %s225_s27 = sshll.u32 %s1020_s26, 4  ;;  %p952_p3 = scmp.eq.s32.totalorder %s1073_s25, 0  ;;  %s226_s27 = int_to_ptr.vmem [resolvable:$true] %s225_s27 }
   0x4   : > { %p1077_p2 = pnand %p921_p0, %p201_p1  ;;  %s993_s29 = scalar_lea.vmem %s226_s27, 8192 }
   0x5   : > { %p994_p7 = scmp.ne.s32.totalorder %s226_s27, %s993_s29  ;;  %p1001_p10 = scmp.lt.s32.totalorder %s226_s27, %s226_s27 }
   0x6   : > { %p948_p4 = pneg %p1077_p2  ;;  %p1002_p11 = scmp.lt.s32.totalorder %s993_s29, %s993_s29 }
   0x8   : > { %p949_p5 = pnand %p952_p3, %p948_p4  ;;  %p1003_p12 = por %p1002_p11, %p1001_p10 }
   0xa   : > { %p984_p6 = pneg %p949_p5 }
   0xc   : > { %p996_p8 = pnand %p994_p7, %p984_p6 }
   0xe   : > { %p997_p9 = pneg %p996_p8 }
  0x10   : > { %p1004_p13 = pnand %p1003_p12, %p997_p9 }
  0x12   : > { %1007 = shalt.err (!%p1004_p13)
}
  0x13   : > { %s1021_s30 = smov 256   ;;  %s1022_s8 = smov 16  }
  0x14   : > { %951 = dma.hbm_to_vmem [thread:$0]  (!%p949_p5), %s1245_s5, 8192, %s226_s27, [#allocation3], %s1021_s30, %s1021_s30, %s1022_s8  }
  0x15   : > { %252 = sbr.rel (%p1077_p2) target bundleno = 621 (0x26d), region = 48 }
  0x1a   : > { %1013 = dma.done.wait (%p952_p3), [#allocation3], 8192  }
  0x1b   : > { %1015 = vsyncadd (%p952_p3), [#allocation3], 4294959104  ;;  %v1023_v0 = vmov 2   ;;  %v1024_v1 = vmov 0   ;;  %v294_v2 = vld [vmem:[%s1241_s1] sm:$0xff]  ;;  %v459_v3 = vld [vmem:[#allocation2 + $0xf8] sm:$0xff] }
  0x1c   : > { %971 = vset.pattern.permute.xlu1 %v1023_v0  ;;  %969 = vset.pattern.permute.xlu0 %v1024_v1  ;;  %v458_v4 = vld [vmem:[#allocation2 + $0xf0] sm:$0xff]  ;;  %v457_v5 = vld [vmem:[#allocation2 + $0xe8] sm:$0xff]  ;;  %v456_v7 = vld [vmem:[#allocation2 + $0xe0] sm:$0xff]  ;;  %v1025_v8 = vmov 1   ;;  %p284_p0 = scmp.lt.s32.totalorder %s1073_s25, 1  ;;  %vm681_vm0 = vcmask 261120  }
  0x1d   : > { %386 = vperm.xlu1 %971, %v294_v2   ;;  %301 = vperm.xlu0 %969, %v294_v2   ;;  %v295_v6 = vld [vmem:[%s1241_s1 + $0x8] sm:$0xff]  ;;  %v455_v9 = vld [vmem:[#allocation2 + $0xd8] sm:$0xff]  ;;  %v454_v10 = vld [vmem:[#allocation2 + $0xd0] sm:$0xff]  ;;  %vm836_vm1 = vcmask 334848  }
  0x1e   : > { %536 = vmatprep.subr.mxu0 %v459_v3  ;;  %v453_v11 = vld [vmem:[#allocation2 + $0xc8] sm:$0xff]  ;;  %v452_v12 = vld [vmem:[#allocation2 + $0xc0] sm:$0xff]  ;;  %v451_v13 = vld [vmem:[#allocation2 + $0xb8] sm:$0xff]  ;;  %s1250_s25 = smov (!%p284_p0, %s1073_s25), 1 }
  0x1f   : > { %537 = vmatpush1.msra.mxu0 %v458_v4  ;;  %v296_v14 = vld [vmem:[%s1241_s1 + $0x10] sm:$0xff]  ;;  %v449_v16 = vld [vmem:[#allocation2 + $0xa8] sm:$0xff]  ;;  %v448_v17 = vld [vmem:[#allocation2 + $0xa0] sm:$0xff]  ;;  %s942_s22 = sshll.u32 %s1250_s25, 3  ;;  %s943_s23 = sshll.u32 %s1250_s25, 7 }
  0x20   : > { %538 = vmatprep.subr.mxu0 %v457_v5  ;;  %v450_v15 = vld [vmem:[#allocation2 + $0xb0] sm:$0xff]  ;;  %v447_v18 = vld [vmem:[#allocation2 + $0x98] sm:$0xff]  ;;  %v445_v21 = vld [vmem:[#allocation2 + $0x88] sm:$0xff]  ;;  %s288_s27 = scalar_lea.vmem %s1240_s0, %s942_s22  ;;  %s1211_s28 = scalar_lea.vmem %s1247_s7, %s943_s23 }
  0x21   : > { %972 = vset.pattern.permute.xlu1 %v1024_v1  ;;  %970 = vset.pattern.permute.xlu0 %v1025_v8  ;;  %v297_v19 = vld [vmem:[%s1241_s1 + $0x18] sm:$0xff]  ;;  %v446_v20 = vld [vmem:[#allocation2 + $0x90] sm:$0xff]  ;;  %v444_v22 = vld [vmem:[#allocation2 + $0x80] sm:$0xff] }
  0x22   : > { %306 = vperm.xlu1 %972, %v295_v6   ;;  %341 = vperm.xlu0 %970, %v294_v2   ;;  %v443_v23 = vld [vmem:[#allocation2 + $0x78] sm:$0xff]  ;;  %v442_v24 = vld [vmem:[#allocation2 + $0x70] sm:$0xff]  ;;  %v441_v25 = vld [vmem:[#allocation2 + $0x68] sm:$0xff] }
  0x23   : > { %539 = vmatpush1.msra.mxu0 %v456_v7  ;;  %v440_v26 = vld [vmem:[#allocation2 + $0x60] sm:$0xff]  ;;  %v439_v27 = vld [vmem:[#allocation2 + $0x58] sm:$0xff]  ;;  %v438_v28 = vld [vmem:[#allocation2 + $0x50] sm:$0xff] }
  0x24   : > { %540 = vmatprep.subr.mxu0 %v455_v9  ;;  %v437_v29 = vld [vmem:[#allocation2 + $0x48] sm:$0xff]  ;;  %v436_v30 = vld [vmem:[#allocation2 + $0x40] sm:$0xff]  ;;  %v435_v31 = vld [vmem:[#allocation2 + $0x38] sm:$0xff] }
  0x25   : > { %541 = vmatpush1.msra.mxu0 %v454_v10  ;;  %v434_v32 = vld [vmem:[#allocation2 + $0x30] sm:$0xff]  ;;  %v433_v33 = vld [vmem:[#allocation2 + $0x28] sm:$0xff]  ;;  %v432_v34 = vld [vmem:[#allocation2 + $0x20] sm:$0xff] }
  0x26   : > { %973 = vset.pattern.permute.xlu1 %v1025_v8  ;;  %974 = vset.pattern.permute.xlu0 %v1023_v0  ;;  %v431_v35 = vld [vmem:[#allocation2 + $0x18] sm:$0xff]  ;;  %v494_v37 = vld [vmem:[%s1242_s2 + $0x10] sm:$0xff]  ;;  %v429_v39 = vld [vmem:[#allocation2 + $0x8] sm:$0xff] }
  0x27   : > { %345 = vperm.xlu1 %973, %v295_v6   ;;  %390 = vperm.xlu0 %974, %v295_v6   ;;  %v495_v36 = vld [vmem:[%s1242_s2 + $0x18] sm:$0xff]  ;;  %v430_v38 = vld [vmem:[#allocation2 + $0x10] sm:$0xff]  ;;  %v633_v40 = vld [vmem:[%s1244_s4] sm:$0xff] }
  0x28   : > { %542 = vmatprep.subr.mxu0 %v453_v11  ;;  %v428_v41 = vld [vmem:[#allocation2] sm:$0xff]  ;;  %v491_v42 = vld [vmem:[#allocation2 + $0x1f8] sm:$0xff]  ;;  %v493_v43 = vld [vmem:[%s1242_s2 + $0x8] sm:$0xff] }
  0x29   : > { %543 = vmatpush1.msra.mxu0 %v452_v12  ;;  %v490_v44 = vld [vmem:[#allocation2 + $0x1f0] sm:$0xff]  ;;  %v489_v45 = vld [vmem:[#allocation2 + $0x1e8] sm:$0xff]  ;;  %v488_v47 = vld [vmem:[#allocation2 + $0x1e0] sm:$0xff] }
  0x2a   : > { %544 = vmatprep.subr.mxu0 %v451_v13  ;;  %v635_v46 = vld [vmem:[%s1244_s4 + $0x10] sm:$0xff]  ;;  %v487_v48 = vld [vmem:[#allocation2 + $0x1d8] sm:$0xff]  ;;  %v492_v49 = vld [vmem:[%s1242_s2] sm:$0xff] }
  0x2b   : > { %975 = vset.pattern.permute.xlu1 %v1024_v1  ;;  %394 = vperm.xlu0 %974, %v296_v14   ;;  %v486_v50 = vld [vmem:[#allocation2 + $0x1d0] sm:$0xff]  ;;  %v485_v51 = vld [vmem:[#allocation2 + $0x1c8] sm:$0xff]  ;;  %v637_v52 = vld [vmem:[%s1244_s4 + $0x20] sm:$0xff] }
  0x2c   : > { %311 = vperm.xlu1 %975, %v296_v14   ;;  %545 = vmatpush1.msra.mxu0 %v450_v15  ;;  %v484_v53 = vld [vmem:[#allocation2 + $0x1c0] sm:$0xff]  ;;  %v483_v54 = vld [vmem:[#allocation2 + $0x1b8] sm:$0xff]  ;;  %v634_v55 = vld [vmem:[%s1244_s4 + $0x8] sm:$0xff] }
  0x2d   : > { %546 = vmatprep.subr.mxu0 %v449_v16  ;;  %v482_v56 = vld [vmem:[#allocation2 + $0x1b0] sm:$0xff]  ;;  %v481_v57 = vld [vmem:[#allocation2 + $0x1a8] sm:$0xff]  ;;  %v480_v59 = vld [vmem:[#allocation2 + $0x1a0] sm:$0xff] }
  0x2e   : > { %547 = vmatpush1.msra.mxu0 %v448_v17  ;;  %v639_v58 = vld [vmem:[%s1244_s4 + $0x30] sm:$0xff]  ;;  %v479_v60 = vld [vmem:[#allocation2 + $0x198] sm:$0xff]  ;;  %v477_v63 = vld [vmem:[#allocation2 + $0x188] sm:$0xff] }
  0x2f   : > { %978 = vset.pattern.permute.xlu0 %v1025_v8  ;;  %548 = vmatprep.subr.mxu0 %v447_v18  ;;  %v636_v61 = vld [vmem:[%s1244_s4 + $0x18] sm:$0xff]  ;;  %v478_v62 = vld [vmem:[#allocation2 + $0x190] sm:$0xff]  ;;  %v638_v2 = vld [vmem:[%s1244_s4 + $0x28] sm:$0xff] }
  0x30   : > { %976 = vset.pattern.permute.xlu1 %v1025_v8  ;;  %353 = vperm.xlu0 %978, %v297_v19   ;;  %v474_v3 = vld [vmem:[#allocation2 + $0x170] sm:$0xff]  ;;  %v473_v4 = vld [vmem:[#allocation2 + $0x168] sm:$0xff]  ;;  %v472_v5 = vld [vmem:[#allocation2 + $0x160] sm:$0xff] }
  0x31   : > { %349 = vperm.xlu1 %976, %v296_v14   ;;  %549 = vmatpush1.msra.mxu0 %v446_v20  ;;  %v471_v6 = vld [vmem:[#allocation2 + $0x158] sm:$0xff]  ;;  %v470_v8 = vld [vmem:[#allocation2 + $0x150] sm:$0xff]  ;;  %v469_v9 = vld [vmem:[#allocation2 + $0x148] sm:$0xff] }
  0x32   : > { %550 = vmatprep.subr.mxu0 %v445_v21  ;;  %v640_v7 = vld [vmem:[%s1244_s4 + $0x38] sm:$0xff]  ;;  %v468_v10 = vld [vmem:[#allocation2 + $0x140] sm:$0xff]  ;;  %v466_v12 = vld [vmem:[#allocation2 + $0x130] sm:$0xff] }
  0x33   : > { %551 = vmatpush1.msra.mxu0 %v444_v22  ;;  %v467_v11 = vld [vmem:[#allocation2 + $0x138] sm:$0xff]  ;;  %v465_v13 = vld [vmem:[#allocation2 + $0x128] sm:$0xff]  ;;  %v464_v14 = vld [vmem:[#allocation2 + $0x120] sm:$0xff] }
  0x34   : > { %552 = vmatprep.subr.mxu0 %v443_v23  ;;  %981 = vset.pattern.permute.xlu0 %v1024_v1  ;;  %v463_v15 = vld [vmem:[#allocation2 + $0x118] sm:$0xff]  ;;  %v462_v16 = vld [vmem:[#allocation2 + $0x110] sm:$0xff]  ;;  %v461_v17 = vld [vmem:[#allocation2 + $0x108] sm:$0xff] }
  0x35   : > { %977 = vset.pattern.permute.xlu1 %v1024_v1  ;;  %553 = vmatpush1.msra.mxu0 %v442_v24  ;;  %v460_v18 = vld [vmem:[#allocation2 + $0x100] sm:$0xff] }
  0x36   : > { %316 = vperm.xlu1 %977, %v297_v19   ;;  %554 = vmatprep.subr.mxu0 %v441_v25  ;;  %v298_v21 = vld [vmem:[%s288_s27] ss:$4 sm:$0x3]  ;;  %v930_v24 = vld [vmem:[%s288_s27 + $0x1] ss:$4 sm:$0x3] }
  0x37   : > { %555 = vmatpush1.msra.mxu0 %v440_v26  ;;  %509 = vperm.xlu0 %981, %v494_v37  }
  0x38   : > { %556 = vmatprep.subr.mxu0 %v439_v27 }
  0x39   : > { %557 = vmatpush1.msra.mxu0 %v438_v28 }
  0x3a   : > { %979 = vset.pattern.permute.xlu1 %v1023_v0  ;;  %558 = vmatprep.subr.mxu0 %v437_v29  ;;  %v476_v0 = vld [vmem:[#allocation2 + $0x180] sm:$0xff] }
  0x3b   : > { %398 = vperm.xlu1 %979, %v297_v19   ;;  %559 = vmatpush1.msra.mxu0 %v436_v30  ;;  %v320_v19 = vlaneseq  ;;  %v931_v29 = vld [vmem:[%s288_s27 + $0x2] ss:$4 sm:$0x3] }
  0x3c   : > { %560 = vmatprep.subr.mxu0 %v435_v31  ;;  %643 = vperm.xlu0 %981, %v633_v40  }
  0x3d   : > { %561 = vmatpush1.msra.mxu0 %v434_v32  ;;  %v321_v20 = vshrl.u32 %v320_v19, 7 }
  0x3e   : > { %562 = vmatprep.subr.mxu0 %v433_v33 }
  0x3f   : > { %563 = vmatpush1.msra.mxu0 %v432_v34  ;;  %980 = vset.pattern.permute.xlu1 %v1024_v1  ;;  %v475_v1 = vld [vmem:[#allocation2 + $0x178] sm:$0xff]  ;;  %v1160_v22 = vsub.s32 0, %v321_v20  ;;  %v1162_v23 = vsub.s32 1, %v321_v20  ;;  %v1026_v20 = vmov 0.0  }
  0x40   : > { %564 = vmatprep.subr.mxu0 %v431_v35  ;;  %514 = vperm.xlu1 %980, %v495_v36  }
  0x41   : > { %565 = vmatpush1.msra.mxu0 %v430_v38  ;;  %653 = vperm.xlu0 %981, %v635_v46   ;;  %v323_v26 = vrot.slane %v298_v21, %v1160_v22  ;;  %v327_v27 = vrot.slane %v298_v21, %v1162_v23  ;;  %v360_v30 = vrot.slane %v930_v24, %v1160_v22 }
  0x42   : > { %566 = vmatprep.subr.mxu0 %v429_v39  ;;  %v364_v31 = vrot.slane %v930_v24, %v1162_v23  ;;  %v405_v32 = vrot.slane %v931_v29, %v1160_v22  ;;  %v409_v33 = vrot.slane %v931_v29, %v1162_v23  ;;  %770 = vmatprep.mubr.f32.mxu1 %v1026_v20  ;;  %v496_v29 = vld [vmem:[%s1246_s6] sm:$0x3] }
  0x43   : > { %567 = vmatpush1.msra.mxu0 %v428_v41 }
  0x44   : > { %568 = vmatprep.subr.mxu0 %v491_v42  ;;  %504 = vperm.xlu1 %980, %v493_v43  }
  0x45   : > { %569 = vmatpush2.msra.mxu0 %v490_v44  ;;  %663 = vperm.xlu0 %981, %v637_v52  }
  0x46   : > { %570 = vmatprep.subr.mxu0 %v489_v45 }
  0x47   : > { %571 = vmatpush2.msra.mxu0 %v488_v47 }
  0x48   : > { %572 = vmatprep.subr.mxu0 %v487_v48  ;;  %499 = vperm.xlu1 %980, %v492_v49  }
  0x49   : > { %573 = vmatpush2.msra.mxu0 %v486_v50  ;;  %673 = vperm.xlu0 %981, %v639_v58  }
  0x4a   : > { %574 = vmatprep.subr.mxu0 %v485_v51 }
  0x4b   : > { %575 = vmatpush2.msra.mxu0 %v484_v53 }
  0x4c   : > { %576 = vmatprep.subr.mxu0 %v483_v54  ;;  %648 = vperm.xlu1 %980, %v634_v55  }
  0x4d   : > { %577 = vmatpush2.msra.mxu0 %v482_v56 }
  0x4e   : > { %578 = vmatprep.subr.mxu0 %v481_v57 }
  0x4f   : > { %579 = vmatpush2.msra.mxu0 %v480_v59 }
  0x50   : > { %580 = vmatprep.subr.mxu0 %v479_v60  ;;  %658 = vperm.xlu1 %980, %v636_v61  }
  0x51   : > { %581 = vmatpush2.msra.mxu0 %v478_v62 }
  0x52   : > { %582 = vmatprep.subr.mxu0 %v477_v63 }
  0x53   : > { %583 = vmatpush2.msra.mxu0 %v476_v0 }
  0x54   : > { %584 = vmatprep.subr.mxu0 %v475_v1  ;;  %668 = vperm.xlu1 %980, %v638_v2  }
  0x55   : > { %585 = vmatpush2.msra.mxu0 %v474_v3 }
  0x56   : > { %586 = vmatprep.subr.mxu0 %v473_v4 }
  0x57   : > { %587 = vmatpush2.msra.mxu0 %v472_v5 }
  0x58   : > { %588 = vmatprep.subr.mxu0 %v471_v6  ;;  %678 = vperm.xlu1 %980, %v640_v7  }
  0x59   : > { %589 = vmatpush2.msra.mxu0 %v470_v8 }
  0x5a   : > { %590 = vmatprep.subr.mxu0 %v469_v9 }
  0x5b   : > { %591 = vmatpush2.msra.mxu0 %v468_v10 }
  0x5c   : > { %592 = vmatprep.subr.mxu0 %v467_v11 }
  0x5d   : > { %593 = vmatpush2.msra.mxu0 %v466_v12 }
  0x5e   : > { %594 = vmatprep.subr.mxu0 %v465_v13 }
  0x5f   : > { %595 = vmatpush2.msra.mxu0 %v464_v14 }
  0x60   : > { %596 = vmatprep.subr.mxu0 %v463_v15 }
  0x61   : > { %597 = vmatpush2.msra.mxu0 %v462_v16 }
  0x62   : > { %598 = vmatprep.subr.mxu0 %v461_v17 }
  0x63   : > { %599 = vmatpush2.msra.mxu0 %v460_v18 }
  0x98   : > { %v387_v25 = vpop.permute.xlu1 %386  ;;  %v302_v28 = vpop.permute.xlu0 %301 }
  0x99   : > { %v330_v34 = vmul.f32 %v323_v26, %v302_v28  ;;  %v331_v35 = vmul.f32 %v327_v27, %v302_v28  ;;  %v412_v40 = vmul.f32 %v405_v32, %v387_v25  ;;  %v413_v41 = vmul.f32 %v409_v33, %v387_v25 }
  0x9d   : > { %v307_v36 = vpop.permute.xlu1 %306  ;;  %v342_v37 = vpop.permute.xlu0 %341 }
  0x9e   : > { %v367_v38 = vmul.f32 %v360_v30, %v342_v37  ;;  %v368_v39 = vmul.f32 %v364_v31, %v342_v37  ;;  %v332_v44 = vmul.f32 %v323_v26, %v307_v36  ;;  %v333_v45 = vmul.f32 %v327_v27, %v307_v36 }
  0xa0   : > { %v375_v42 = vadd.f32 %v367_v38, %v330_v34  ;;  %v376_v43 = vadd.f32 %v368_v39, %v331_v35 }
  0xa2   : > { %v346_v46 = vpop.permute.xlu1 %345  ;;  %v421_v47 = vadd.f32 %v413_v41, %v376_v43  ;;  %v391_v48 = vpop.permute.xlu0 %390  ;;  %v420_v49 = vadd.f32 %v412_v40, %v375_v42 }
  0xa3   : > { %v369_v50 = vmul.f32 %v360_v30, %v346_v46  ;;  %v370_v51 = vmul.f32 %v364_v31, %v346_v46  ;;  %v414_v52 = vmul.f32 %v405_v32, %v391_v48  ;;  %v415_v53 = vmul.f32 %v409_v33, %v391_v48 }
  0xa4   : > { %600 = vmatprep.mubr.f32.mxu0 %v421_v47 }
  0xa5   : > { %v377_v54 = vadd.f32 %v369_v50, %v332_v44  ;;  %v378_v55 = vadd.f32 %v370_v51, %v333_v45  ;;  %601 = vmatmul.mubr.f32.vlgmr.msra.gmra.mxu0 %v420_v49 }
  0xa6   : > { %v395_v59 = vpop.permute.xlu0 %394 }
  0xa7   : > { %v422_v56 = vadd.f32 %v414_v52, %v377_v54  ;;  %v423_v57 = vadd.f32 %v415_v53, %v378_v55  ;;  %v312_v58 = vpop.permute.xlu1 %311  ;;  %v416_v1 = vmul.f32 %v405_v32, %v395_v59  ;;  %v417_v2 = vmul.f32 %v409_v33, %v395_v59  ;;  %v625_v52 = vld [vmem:[%s1243_s3] sm:$0xff]  ;;  %v626_v53 = vld [vmem:[%s1243_s3 + $0x8] sm:$0xff]  ;;  %v627_v54 = vld [vmem:[%s1243_s3 + $0x10] sm:$0xff] }
  0xa8   : > { %v334_v61 = vmul.f32 %v323_v26, %v312_v58  ;;  %v335_v62 = vmul.f32 %v327_v27, %v312_v58  ;;  %v628_v55 = vld [vmem:[%s1243_s3 + $0x18] sm:$0xff]  ;;  %v631_v58 = vld [vmem:[%s1243_s3 + $0x30] sm:$0xff] }
  0xa9   : > { %606 = vmatprep.mubr.f32.mxu0 %v423_v57  ;;  %v630_v57 = vld [vmem:[%s1243_s3 + $0x28] sm:$0xff]  ;;  %v632_v59 = vld [vmem:[%s1243_s3 + $0x38] sm:$0xff] }
  0xaa   : > { %607 = vmatmul.mubr.f32.gmra.mxu0 %v422_v56  ;;  %v629_v56 = vld [vmem:[%s1243_s3 + $0x20] sm:$0xff] }
  0xab   : > { %v354_v5 = vpop.permute.xlu0 %353 }
  0xac   : > { %v350_v60 = vpop.permute.xlu1 %349  ;;  %v373_v11 = vmul.f32 %v360_v30, %v354_v5  ;;  %v374_v12 = vmul.f32 %v364_v31, %v354_v5 }
  0xad   : > { %v371_v63 = vmul.f32 %v360_v30, %v350_v60  ;;  %v372_v0 = vmul.f32 %v364_v31, %v350_v60  ;;  %v521_v31 = vrot.slane %v496_v29, %v1160_v22 }
  0xaf   : > { %v379_v3 = vadd.f32 %v371_v63, %v334_v61  ;;  %v380_v4 = vadd.f32 %v372_v0, %v335_v62 }
  0xb1   : > { %v317_v6 = vpop.permute.xlu1 %316  ;;  %v425_v7 = vadd.f32 %v417_v2, %v380_v4  ;;  %v424_v8 = vadd.f32 %v416_v1, %v379_v3 }
  0xb2   : > { %v336_v9 = vmul.f32 %v323_v26, %v317_v6  ;;  %v337_v10 = vmul.f32 %v327_v27, %v317_v6  ;;  %v510_v35 = vpop.permute.xlu0 %509 }
  0xb3   : > { %612 = vmatprep.mubr.f32.mxu0 %v425_v7  ;;  %v532_v39 = vmul.f32 %v521_v31, %v510_v35 }
  0xb4   : > { %613 = vmatmul.mubr.f32.gmra.mxu0 %v424_v8  ;;  %v381_v14 = vadd.f32 %v373_v11, %v336_v9  ;;  %v382_v15 = vadd.f32 %v374_v12, %v337_v10 }
  0xb6   : > { %v399_v13 = vpop.permute.xlu1 %398 }
  0xb7   : > { %v418_v16 = vmul.f32 %v405_v32, %v399_v13  ;;  %v419_v17 = vmul.f32 %v409_v33, %v399_v13  ;;  %v525_v33 = vrot.slane %v496_v29, %v1162_v23  ;;  %v644_v60 = vpop.permute.xlu0 %643 }
  0xb9   : > { %v426_v18 = vadd.f32 %v418_v16, %v381_v14  ;;  %v427_v19 = vadd.f32 %v419_v17, %v382_v15  ;;  %v533_v38 = vmul.f32 %v525_v33, %v510_v35 }
  0xbb   : > { %618 = vmatprep.mubr.f32.mxu0 %v427_v19  ;;  %v515_v26 = vpop.permute.xlu1 %514 }
  0xbc   : > { %619 = vmatmul.mubr.f32.gmra.mxu0 %v426_v18  ;;  %v534_v34 = vmul.f32 %v521_v31, %v515_v26  ;;  %v535_v37 = vmul.f32 %v525_v33, %v515_v26  ;;  %v654_v9 = vpop.permute.xlu0 %653 }
  0xbf   : > { %v505_v30 = vpop.permute.xlu1 %504 }
  0xc0   : > { %v531_v41 = vmul.f32 %v525_v33, %v505_v30  ;;  %v530_v44 = vmul.f32 %v521_v31, %v505_v30 }
  0xc3   : > { %v500_v42 = vpop.permute.xlu1 %499 }
  0xc4   : > { %v529_v46 = vmul.f32 %v525_v33, %v500_v42  ;;  %v528_v48 = vmul.f32 %v521_v31, %v500_v42 }
  0xc7   : > { %v649_v2 = vpop.permute.xlu1 %648 }
  0xcb   : > { %v659_v16 = vpop.permute.xlu1 %658 }
 0x165   : > { %v602_v21 = vpop.f32.mrf.mxu0 }
 0x166   : > { %v603_v51 = vadd.f32 %v602_v21, %v528_v48 }
 0x167   : > { %v604_v24 = vpop.f32.mrf.mxu0 }
 0x168   : > { %v605_v50 = vadd.f32 %v604_v24, %v529_v46 }
 0x16a   : > { %v608_v25 = vpop.f32.mrf.mxu0 }
 0x16b   : > { %v609_v23 = vadd.f32 %v608_v25, %v530_v44  ;;  %v664_v25 = vpop.permute.xlu0 %663 }
 0x16c   : > { %v610_v27 = vpop.f32.mrf.mxu0 }
 0x16d   : > { %v611_v49 = vadd.f32 %v610_v27, %v531_v41 }
 0x174   : > { %v614_v28 = vpop.f32.mrf.mxu0 }
 0x175   : > { %v615_v22 = vadd.f32 %v614_v28, %v532_v39  ;;  %v674_v39 = vpop.permute.xlu0 %673 }
 0x176   : > { %v616_v32 = vpop.f32.mrf.mxu0 }
 0x177   : > { %v617_v47 = vadd.f32 %v616_v32, %v533_v38  ;;  %v669_v32 = vpop.permute.xlu1 %668 }
 0x17b   : > { %v679_v46 = vpop.permute.xlu1 %678 }
 0x17c   : > { %v620_v36 = vpop.f32.mrf.mxu0 }
 0x17d   : > { %v621_v45 = vadd.f32 %v620_v36, %v534_v34 }
 0x17e   : > { %v622_v40 = vpop.f32.mrf.mxu0 }
 0x17f   : > { %v623_v43 = vadd.f32 %v622_v40, %v535_v37 }
 0x181   : > { %730 = vmatprep.subr.mxu1 %v623_v43 }
 0x182   : > { %731 = vmatpush1.msra.mxu1 %v621_v45 }
 0x183   : > { %732 = vmatprep.subr.mxu1 %v617_v47 }
 0x184   : > { %733 = vmatpush1.msra.mxu1 %v615_v22 }
 0x185   : > { %734 = vmatprep.subr.mxu1 %v611_v49 }
 0x186   : > { %735 = vmatpush1.msra.mxu1 %v609_v23 }
 0x187   : > { %736 = vmatprep.subr.mxu1 %v605_v50 }
 0x188   : > { %737 = vmatpush1.msra.mxu1 %v603_v51 }
 0x189   : > { %932 = vmatmul.mubr.msk.f32.vlgmr.msra.gmra.mxu1 %vm681_vm0, %v625_v52 }
 0x18a   : > { %776 = vmatprep.mubr.f32.mxu1 %v1026_v20 }
 0x18d   : > { %933 = vmatmul.mubr.msk.f32.gmra.mxu1 %vm681_vm0, %v626_v53 }
 0x18e   : > { %782 = vmatprep.mubr.f32.mxu1 %v1026_v20 }
 0x191   : > { %934 = vmatmul.mubr.msk.f32.gmra.mxu1 %vm681_vm0, %v627_v54 }
 0x192   : > { %788 = vmatprep.mubr.f32.mxu1 %v1026_v20 }
 0x195   : > { %935 = vmatmul.mubr.msk.f32.gmra.mxu1 %vm681_vm0, %v628_v55 }
 0x196   : > { %794 = vmatprep.mubr.f32.mxu1 %v1026_v20 }
 0x199   : > { %936 = vmatmul.mubr.msk.f32.gmra.mxu1 %vm681_vm0, %v629_v56 }
 0x19a   : > { %800 = vmatprep.mubr.f32.mxu1 %v1026_v20 }
 0x19d   : > { %937 = vmatmul.mubr.msk.f32.gmra.mxu1 %vm681_vm0, %v630_v57 }
 0x19e   : > { %806 = vmatprep.mubr.f32.mxu1 %v1026_v20 }
 0x1a1   : > { %938 = vmatmul.mubr.msk.f32.gmra.mxu1 %vm681_vm0, %v631_v58 }
 0x1a2   : > { %812 = vmatprep.mubr.f32.mxu1 %v1026_v20 }
 0x1a5   : > { %939 = vmatmul.mubr.msk.f32.gmra.mxu1 %vm681_vm0, %v632_v59 }
 0x249   : > { %v772_v61 = vpop.f32.mrf.mxu1 }
 0x24a   : > { %v773_v62 = vadd.f32 %v772_v61, %v644_v60 }
 0x24b   : > { %v774_v63 = vpop.f32.mrf.mxu1 }
 0x24c   : > { %v819_v0 = vadd.f32 9.0, %v773_v62  ;;  %v775_v1 = vadd.f32 %v774_v63, %v644_v60 }
 0x24d   : > { %v778_v3 = vpop.f32.mrf.mxu1 }
 0x24e   : > { %835 = vst [vmem:[%s1211_s28] sm:$0xff] %v819_v0  ;;  %v820_v4 = vadd.f32 9.0, %v775_v1  ;;  %v779_v5 = vadd.f32 %v778_v3, %v649_v2 }
 0x24f   : > { %v780_v6 = vpop.f32.mrf.mxu1 }
 0x250   : > { %837 = vst.msk [vmem:[%s1211_s28 + $0x8] sm:$0xff] %vm836_vm1, %v820_v4  ;;  %v821_v7 = vadd.f32 9.0, %v779_v5  ;;  %v781_v8 = vadd.f32 %v780_v6, %v649_v2 }
 0x251   : > { %v784_v10 = vpop.f32.mrf.mxu1 }
 0x252   : > { %838 = vst [vmem:[%s1211_s28 + $0x10] sm:$0xff] %v821_v7  ;;  %v822_v11 = vadd.f32 9.0, %v781_v8  ;;  %v785_v12 = vadd.f32 %v784_v10, %v654_v9 }
 0x253   : > { %v786_v13 = vpop.f32.mrf.mxu1 }
 0x254   : > { %839 = vst.msk [vmem:[%s1211_s28 + $0x18] sm:$0xff] %vm836_vm1, %v822_v11  ;;  %v823_v14 = vadd.f32 9.0, %v785_v12  ;;  %v787_v15 = vadd.f32 %v786_v13, %v654_v9 }
 0x255   : > { %v790_v17 = vpop.f32.mrf.mxu1 }
 0x256   : > { %840 = vst [vmem:[%s1211_s28 + $0x20] sm:$0xff] %v823_v14  ;;  %v824_v18 = vadd.f32 9.0, %v787_v15  ;;  %v791_v19 = vadd.f32 %v790_v17, %v659_v16 }
 0x257   : > { %v792_v20 = vpop.f32.mrf.mxu1 }
 0x258   : > { %841 = vst.msk [vmem:[%s1211_s28 + $0x28] sm:$0xff] %vm836_vm1, %v824_v18  ;;  %v825_v21 = vadd.f32 9.0, %v791_v19  ;;  %v793_v24 = vadd.f32 %v792_v20, %v659_v16 }
 0x259   : > { %v796_v26 = vpop.f32.mrf.mxu1 }
 0x25a   : > { %842 = vst [vmem:[%s1211_s28 + $0x30] sm:$0xff] %v825_v21  ;;  %v826_v27 = vadd.f32 9.0, %v793_v24  ;;  %v797_v28 = vadd.f32 %v796_v26, %v664_v25 }
 0x25b   : > { %v798_v29 = vpop.f32.mrf.mxu1 }
 0x25c   : > { %843 = vst.msk [vmem:[%s1211_s28 + $0x38] sm:$0xff] %vm836_vm1, %v826_v27  ;;  %v827_v30 = vadd.f32 9.0, %v797_v28  ;;  %v799_v31 = vadd.f32 %v798_v29, %v664_v25 }
 0x25d   : > { %v802_v33 = vpop.f32.mrf.mxu1 }
 0x25e   : > { %844 = vst [vmem:[%s1211_s28 + $0x40] sm:$0xff] %v827_v30  ;;  %v828_v34 = vadd.f32 9.0, %v799_v31  ;;  %v803_v35 = vadd.f32 %v802_v33, %v669_v32 }
 0x25f   : > { %v804_v36 = vpop.f32.mrf.mxu1 }
 0x260   : > { %845 = vst.msk [vmem:[%s1211_s28 + $0x48] sm:$0xff] %vm836_vm1, %v828_v34  ;;  %v829_v37 = vadd.f32 9.0, %v803_v35  ;;  %v805_v38 = vadd.f32 %v804_v36, %v669_v32 }
 0x261   : > { %v808_v40 = vpop.f32.mrf.mxu1 }
 0x262   : > { %846 = vst [vmem:[%s1211_s28 + $0x50] sm:$0xff] %v829_v37  ;;  %v830_v41 = vadd.f32 9.0, %v805_v38  ;;  %v809_v42 = vadd.f32 %v808_v40, %v674_v39 }
 0x263   : > { %v810_v43 = vpop.f32.mrf.mxu1 }
 0x264   : > { %847 = vst.msk [vmem:[%s1211_s28 + $0x58] sm:$0xff] %vm836_vm1, %v830_v41  ;;  %v831_v44 = vadd.f32 9.0, %v809_v42  ;;  %v811_v45 = vadd.f32 %v810_v43, %v674_v39 }
 0x265   : > { %v814_v47 = vpop.f32.mrf.mxu1 }
 0x266   : > { %848 = vst [vmem:[%s1211_s28 + $0x60] sm:$0xff] %v831_v44  ;;  %v832_v48 = vadd.f32 9.0, %v811_v45  ;;  %v815_v22 = vadd.f32 %v814_v47, %v679_v46 }
 0x267   : > { %v816_v49 = vpop.f32.mrf.mxu1 }
 0x268   : > { %849 = vst.msk [vmem:[%s1211_s28 + $0x68] sm:$0xff] %vm836_vm1, %v832_v48  ;;  %v833_v23 = vadd.f32 9.0, %v815_v22  ;;  %v817_v50 = vadd.f32 %v816_v49, %v679_v46 }
 0x26a   : > { %850 = vst [vmem:[%s1211_s28 + $0x70] sm:$0xff] %v833_v23  ;;  %v834_v51 = vadd.f32 9.0, %v817_v50 }
 0x26c   : > { %851 = vst.msk [vmem:[%s1211_s28 + $0x78] sm:$0xff] %vm836_vm1, %v834_v51 }
 0x26d PF: > { %s18_s24 = sadd.s32 1, %s1018_s24  }
 0x26e   : > { %p15_p1 = scmp.ge.s32.totalorder %s18_s24, 4  }
 0x270   :  { %17 = sbr.rel (!%p15_p1) target bundleno = 1 (0x1), region = 85 }
 0x275   :  { %873 = vsyncpa [#allocation3], 1 }
 0x276   :  { %875 = vsyncpa [#allocation3 + $0x1], 1 }

</bundles_post_ra>
